<compile_context>
chip_gen: v7x
topology: tpu7x:2x2x1
jax: 0.10.0
libtpu: 0.0.40
codegen_flags: <defaults>
</compile_context>

<pallas_src>
import functools

import jax
import jax.numpy as jnp
from jax.experimental import pallas as pl
from jax.experimental.pallas import tpu as pltpu


def _cnn_kernel(idx_ref, tw_ref, wdense_ref, bias_ref, o_ref, *,
                Bt, Lc_p, V_pad, H, O_pad, K, pool_k, T_pool):
    """One batch tile of the CNN forward.

    idx_ref:   (K, Bt*Lc_p, 1) int32  per-tap token indices (padding token = zero row)
    tw_ref:    (K, V_pad, H)  bf16    per-tap token->hidden tables (table @ Wconv_k)
    wdense_ref:(H, O_pad)     bf16    dense weight (columns >= O are zero)
    bias_ref:  (1, O_pad)     f32     T_pool * (b_conv @ Wd.T + b_dense), zero padded
    o_ref:     (Bt, O_pad)    bf16    lane-dense output slab
    """
    N = Bt * Lc_p

    # --- embedding gather + Conv1d, fused: K one-hot MXU matmuls ---------------
    vocab_iota = jax.lax.broadcasted_iota(jnp.int32, (N, V_pad), 1)
    hidden = jnp.zeros((N, H), jnp.float32)
    for k in range(K):                                   # K is small & static
        onehot = (idx_ref[k] == vocab_iota).astype(jnp.bfloat16)        # (N, V_pad)
        hidden = hidden + jnp.dot(onehot, tw_ref[k],
                                  preferred_element_type=jnp.float32)   # (N, H)

    # (N, H) -> (Bt, Lc_p, H): layout-preserving (Lc_p is a multiple of 8).
    hidden3 = hidden.reshape(Bt, Lc_p, H)

    # --- MaxPool1d(kernel=stride=pool_k) via masked window-max -----------------
    # The mask keeps every window fully inside the valid conv range, so padded /
    # garbage rows (l >= L_out) can never be selected.
    pos = jax.lax.broadcasted_iota(jnp.int32, (Bt, Lc_p, H), 1)
    pooled = jnp.zeros((Bt, H), jnp.float32)
    for t in range(T_pool):                              # T_pool is small & static
        in_win = (pos >= t * pool_k) & (pos < (t + 1) * pool_k)
        pooled = pooled + jnp.max(
            jnp.where(in_win, hidden3, jnp.float32(-1e30)), axis=1)

    # --- dense + summed-window bias (conv bias folded into bias_ref) -----------
    out = jnp.dot(pooled.astype(jnp.bfloat16), wdense_ref[...],
                  preferred_element_type=jnp.float32)
    o_ref[...] = (out + bias_ref[...]).astype(o_ref.dtype)              # full-lane store


def cnn_forward(text_indices, embedding_matrix, w_conv, b_conv, w_dense, b_dense,
                *, kernel_size, padding, max_seq_len):
    """Matches CNN.forward([text_indices]) of the PyTorch module."""
    B, L = text_indices.shape
    V, E = embedding_matrix.shape
    H = w_conv.shape[0]
    O = w_dense.shape[0]
    K = kernel_size

    L_out = L + 2 * padding - K + 1                      # valid conv-output length
    pool_k = max_seq_len - K + 1                          # MaxPool1d kernel == stride
    T_pool = (L_out - pool_k) // pool_k + 1
    assert T_pool >= 1, "sequence shorter than the pooling window"

    # --- batch tiling: big tiles to amortize per-step overhead, >=2 steps if possible
    Bt = min(128, 8 * pl.cdiv(B, 8))
    if pl.cdiv(B, Bt) < 2 and Bt > 8:                     # v7x: feed both TensorCores
        Bt = 8 * pl.cdiv(pl.cdiv(B, 2), 8)
    B_pad = Bt * pl.cdiv(B, Bt)
    n_steps = B_pad // Bt

    Lc_p = 8 * pl.cdiv(L_out, 8)                          # sublane-aligned conv length
    V_pad = 128 * pl.cdiv(V + 1, 128)                     # row V is the zero "pad token"
    O_pad = 128 * pl.cdiv(O, 128)                          # lane-dense output slab

    # --- weight-only precompute (tiny, XLA): fold embedding into per-tap tables ---
    table_f32 = jnp.pad(embedding_matrix.astype(jnp.float32), ((0, V_pad - V), (0, 0)))
    # TW[k, v, h] = sum_e table[v, e] * Wconv[h, e, k]
    tw = jnp.einsum('ve,hek->kvh', table_f32, w_conv.astype(jnp.float32)).astype(jnp.bfloat16)
    wdense_p = jnp.pad(w_dense.T.astype(jnp.float32), ((0, 0), (0, O_pad - O))).astype(jnp.bfloat16)
    bias_out = T_pool * (b_conv.astype(jnp.float32) @ w_dense.T.astype(jnp.float32)
                         + b_dense.astype(jnp.float32))
    bias_out = jnp.pad(bias_out.reshape(1, O), ((0, 0), (0, O_pad - O)))

    # --- per-tap shifted index columns (tiny int32 XLA glue) ----------------------
    idx_b = jnp.pad(text_indices.astype(jnp.int32), ((0, B_pad - B), (0, 0)),
                    constant_values=V)                    # padded batch rows -> zero rows
    cols = jnp.arange(Lc_p, dtype=jnp.int32)
    taps = []
    for k in range(K):
        src = cols + (k - padding)                        # original-sequence positions
        valid = (src >= 0) & (src < L)
        gathered = idx_b[:, jnp.clip(src, 0, L - 1)]      # (B_pad, Lc_p)
        taps.append(jnp.where(valid[None, :], gathered, V))
    idx_taps = jnp.stack(taps, axis=0).reshape(K, B_pad * Lc_p, 1)

    kernel = functools.partial(_cnn_kernel, Bt=Bt, Lc_p=Lc_p, V_pad=V_pad, H=H,
                               O_pad=O_pad, K=K, pool_k=pool_k, T_pool=T_pool)

    out = pl.pallas_call(
        kernel,
        out_shape=jax.ShapeDtypeStruct((B_pad, O_pad), jnp.bfloat16),
        grid_spec=pltpu.PrefetchScalarGridSpec(
            num_scalar_prefetch=0,
            grid=(n_steps,),
            in_specs=[
                pl.BlockSpec((K, Bt * Lc_p, 1), lambda b: (0, b, 0)),   # per-tap indices
                pl.BlockSpec((K, V_pad, H), lambda b: (0, 0, 0)),       # tap tables (resident)
                pl.BlockSpec((H, O_pad), lambda b: (0, 0)),             # dense weight
                pl.BlockSpec((1, O_pad), lambda b: (0, 0)),             # folded bias
            ],
            out_specs=pl.BlockSpec((Bt, O_pad), lambda b: (b, 0)),
        ),
        compiler_params=pltpu.CompilerParams(
            dimension_semantics=("parallel",),
            vmem_limit_bytes=32 * 1024 * 1024,            # headroom over v5e's 16MiB default
        ),
    )(idx_taps, tw, wdense_p, bias_out)

    return out[:B, :O].astype(jnp.float32)                # (B, O)


def cnn_reference(text_indices, embedding_matrix, w_conv, b_conv, w_dense, b_dense,
                  *, kernel_size, padding, max_seq_len):
    """Pure-JAX (f32) replica of the PyTorch forward, for verification."""
    x = embedding_matrix[text_indices].astype(jnp.float32)          # (B, L, E)
    xt = jnp.transpose(x, (0, 2, 1))                                 # (B, E, L)
    h = jax.lax.conv_general_dilated(
        xt, w_conv, window_strides=(1,), padding=[(padding, padding)],
        dimension_numbers=("NCH", "OIH", "NCH"))
    h = h + b_conv[None, :, None]                                    # (B, H, L_out)
    pool_k = max_seq_len - kernel_size + 1
    T_pool = (h.shape[2] - pool_k) // pool_k + 1
    pooled = jnp.stack(
        [jnp.max(h[:, :, t * pool_k:(t + 1) * pool_k], axis=2) for t in range(T_pool)],
        axis=2)                                                      # (B, H, T_pool)
    tr = jnp.transpose(pooled, (0, 2, 1))                            # (B, T_pool, H)
    out = tr @ w_dense.T + b_dense                                   # (B, T_pool, O)
    return out.sum(axis=1)                                           # (B, O)


if __name__ == "__main__":
    # Small config consistent with the module.
    B, MAX_SEQ_LEN = 2, 16
    VOCAB, EMBED_DIM = 50, 32
    HIDDEN_DIM, KERNEL_SIZE, PADDING = 32, 3, 0
    OUTPUT_DIM = 3

    key = jax.random.PRNGKey(0)
    k_emb, k_wc, k_bc, k_wd, k_bd, k_idx = jax.random.split(key, 6)

    embedding_matrix = jax.random.normal(k_emb, (VOCAB, EMBED_DIM), jnp.float32)
    w_conv = 0.1 * jax.random.normal(k_wc, (HIDDEN_DIM, EMBED_DIM, KERNEL_SIZE), jnp.float32)
    b_conv = 0.1 * jax.random.normal(k_bc, (HIDDEN_DIM,), jnp.float32)
    w_dense = 0.1 * jax.random.normal(k_wd, (OUTPUT_DIM, HIDDEN_DIM), jnp.float32)
    b_dense = 0.1 * jax.random.normal(k_bd, (OUTPUT_DIM,), jnp.float32)
    text_indices = jax.random.randint(k_idx, (B, MAX_SEQ_LEN), 0, VOCAB, jnp.int32)

    out = cnn_forward(text_indices, embedding_matrix, w_conv, b_conv, w_dense, b_dense,
                      kernel_size=KERNEL_SIZE, padding=PADDING, max_seq_len=MAX_SEQ_LEN)
    out = jax.block_until_ready(out)

    ref = cnn_reference(text_indices, embedding_matrix, w_conv, b_conv, w_dense, b_dense,
                        kernel_size=KERNEL_SIZE, padding=PADDING, max_seq_len=MAX_SEQ_LEN)
    assert out.shape == (B, OUTPUT_DIM)
    # bf16 tables / MXU inputs / output slab (f32 accumulation) vs f32 reference.
    assert jnp.allclose(out, ref, atol=3e-2, rtol=3e-2), (out, ref)

    print("KERNEL_OK")
</pallas_src>

<mosaic_0001>
module attributes {stable_mosaic.version = 11 : i64} {
  func.func @_cnn_kernel(%arg0: i32, %arg1: memref<3x128x1xi32, #tpu.memory_space<vmem>>, %arg2: memref<3x128x32xbf16, #tpu.memory_space<vmem>>, %arg3: memref<32x128xbf16, #tpu.memory_space<vmem>>, %arg4: memref<1x128xf32, #tpu.memory_space<vmem>>, %arg5: memref<8x128xbf16, #tpu.memory_space<vmem>>) attributes {dimension_semantics = [#tpu.dimension_semantics<parallel>], iteration_bounds = array<i64: 1>, scalar_prefetch = 0 : i64, scratch_operands = 0 : i64, tpu.core_type = #tpu.core_type<tc>, window_params = [{transform_indices = @transform_0, window_bounds = array<i64: 3, 128, 1>}, {pipeline_mode = #tpu.pipeline_mode<synchronous>, transform_indices = @transform_1, window_bounds = array<i64: 3, 128, 32>}, {pipeline_mode = #tpu.pipeline_mode<synchronous>, transform_indices = @transform_2, window_bounds = array<i64: 32, 128>}, {pipeline_mode = #tpu.pipeline_mode<synchronous>, transform_indices = @transform_3, window_bounds = array<i64: 1, 128>}, {transform_indices = @transform_4, window_bounds = array<i64: 8, 128>}]} {
    %0 = tpu.iota {dimensions = array<i32: 1>} : vector<128x128xi32>
    %cst = arith.constant 0.000000e+00 : f32
    %1 = vector.broadcast %cst : f32 to vector<128x32xf32>
    %c0 = arith.constant 0 : index
    %c0_0 = arith.constant 0 : index
    %c0_1 = arith.constant 0 : index
    %2 = vector.load %arg1[%c0, %c0_0, %c0_1] : memref<3x128x1xi32, #tpu.memory_space<vmem>>, vector<1x128x1xi32>
    %3 = vector.shape_cast %2 : vector<1x128x1xi32> to vector<128x1xi32>
    %4 = vector.broadcast %3 : vector<128x1xi32> to vector<128x128xi32>
    %5 = arith.cmpi eq, %4, %0 : vector<128x128xi32>
    %6 = arith.extui %5 : vector<128x128xi1> to vector<128x128xi32>
    %7 = arith.sitofp %6 : vector<128x128xi32> to vector<128x128xf32>
    %8 = arith.truncf %7 : vector<128x128xf32> to vector<128x128xbf16>
    %c0_2 = arith.constant 0 : index
    %c0_3 = arith.constant 0 : index
    %c0_4 = arith.constant 0 : index
    %9 = vector.load %arg2[%c0_2, %c0_3, %c0_4] : memref<3x128x32xbf16, #tpu.memory_space<vmem>>, vector<1x128x32xbf16>
    %10 = vector.shape_cast %9 : vector<1x128x32xbf16> to vector<128x32xbf16>
    %cst_5 = arith.constant dense<0.000000e+00> : vector<128x32xf32>
    %11 = tpu.matmul %8, %10, %cst_5 {dimension_numbers = #tpu.dot_dimension_numbers<[1], [0], [0], [1], [0, 0, 1, 1], [], []>} : vector<128x128xbf16>, vector<128x32xbf16>, vector<128x32xf32> -> vector<128x32xf32>
    %12 = arith.addf %1, %11 : vector<128x32xf32>
    %c1 = arith.constant 1 : index
    %c0_6 = arith.constant 0 : index
    %c0_7 = arith.constant 0 : index
    %13 = vector.load %arg1[%c1, %c0_6, %c0_7] : memref<3x128x1xi32, #tpu.memory_space<vmem>>, vector<1x128x1xi32>
    %14 = vector.shape_cast %13 : vector<1x128x1xi32> to vector<128x1xi32>
    %15 = vector.broadcast %14 : vector<128x1xi32> to vector<128x128xi32>
    %16 = arith.cmpi eq, %15, %0 : vector<128x128xi32>
    %17 = arith.extui %16 : vector<128x128xi1> to vector<128x128xi32>
    %18 = arith.sitofp %17 : vector<128x128xi32> to vector<128x128xf32>
    %19 = arith.truncf %18 : vector<128x128xf32> to vector<128x128xbf16>
    %c1_8 = arith.constant 1 : index
    %c0_9 = arith.constant 0 : index
    %c0_10 = arith.constant 0 : index
    %20 = vector.load %arg2[%c1_8, %c0_9, %c0_10] : memref<3x128x32xbf16, #tpu.memory_space<vmem>>, vector<1x128x32xbf16>
    %21 = vector.shape_cast %20 : vector<1x128x32xbf16> to vector<128x32xbf16>
    %cst_11 = arith.constant dense<0.000000e+00> : vector<128x32xf32>
    %22 = tpu.matmul %19, %21, %cst_11 {dimension_numbers = #tpu.dot_dimension_numbers<[1], [0], [0], [1], [0, 0, 1, 1], [], []>} : vector<128x128xbf16>, vector<128x32xbf16>, vector<128x32xf32> -> vector<128x32xf32>
    %23 = arith.addf %12, %22 : vector<128x32xf32>
    %c2 = arith.constant 2 : index
    %c0_12 = arith.constant 0 : index
    %c0_13 = arith.constant 0 : index
    %24 = vector.load %arg1[%c2, %c0_12, %c0_13] : memref<3x128x1xi32, #tpu.memory_space<vmem>>, vector<1x128x1xi32>
    %25 = vector.shape_cast %24 : vector<1x128x1xi32> to vector<128x1xi32>
    %26 = vector.broadcast %25 : vector<128x1xi32> to vector<128x128xi32>
    %27 = arith.cmpi eq, %26, %0 : vector<128x128xi32>
    %28 = arith.extui %27 : vector<128x128xi1> to vector<128x128xi32>
    %29 = arith.sitofp %28 : vector<128x128xi32> to vector<128x128xf32>
    %30 = arith.truncf %29 : vector<128x128xf32> to vector<128x128xbf16>
    %c2_14 = arith.constant 2 : index
    %c0_15 = arith.constant 0 : index
    %c0_16 = arith.constant 0 : index
    %31 = vector.load %arg2[%c2_14, %c0_15, %c0_16] : memref<3x128x32xbf16, #tpu.memory_space<vmem>>, vector<1x128x32xbf16>
    %32 = vector.shape_cast %31 : vector<1x128x32xbf16> to vector<128x32xbf16>
    %cst_17 = arith.constant dense<0.000000e+00> : vector<128x32xf32>
    %33 = tpu.matmul %30, %32, %cst_17 {dimension_numbers = #tpu.dot_dimension_numbers<[1], [0], [0], [1], [0, 0, 1, 1], [], []>} : vector<128x128xbf16>, vector<128x32xbf16>, vector<128x32xf32> -> vector<128x32xf32>
    %34 = arith.addf %23, %33 : vector<128x32xf32>
    %35 = vector.shape_cast %34 : vector<128x32xf32> to vector<8x16x32xf32>
    %36 = tpu.iota {dimensions = array<i32: 1>} : vector<8x16x32xi32>
    %cst_18 = arith.constant 0.000000e+00 : f32
    %37 = vector.broadcast %cst_18 : f32 to vector<8x32xf32>
    %c0_i32 = arith.constant 0 : i32
    %38 = vector.broadcast %c0_i32 : i32 to vector<8x16x32xi32>
    %39 = arith.cmpi sge, %36, %38 : vector<8x16x32xi32>
    %c14_i32 = arith.constant 14 : i32
    %40 = vector.broadcast %c14_i32 : i32 to vector<8x16x32xi32>
    %41 = arith.cmpi slt, %36, %40 : vector<8x16x32xi32>
    %42 = arith.andi %39, %41 : vector<8x16x32xi1>
    %cst_19 = arith.constant -1.000000e+30 : f32
    %43 = vector.broadcast %cst_19 : f32 to vector<8x16x32xf32>
    %44 = arith.select %42, %35, %43 : vector<8x16x32xi1>, vector<8x16x32xf32>
    %cst_20 = arith.constant dense<0xFF800000> : vector<8x32xf32>
    %45 = vector.multi_reduction <maximumf>, %44, %cst_20 [1] : vector<8x16x32xf32> to vector<8x32xf32>
    %46 = arith.addf %37, %45 : vector<8x32xf32>
    %47 = arith.truncf %46 : vector<8x32xf32> to vector<8x32xbf16>
    %c0_21 = arith.constant 0 : index
    %c0_22 = arith.constant 0 : index
    %48 = vector.load %arg3[%c0_21, %c0_22] : memref<32x128xbf16, #tpu.memory_space<vmem>>, vector<32x128xbf16>
    %cst_23 = arith.constant dense<0.000000e+00> : vector<8x128xf32>
    %49 = tpu.matmul %47, %48, %cst_23 {dimension_numbers = #tpu.dot_dimension_numbers<[1], [0], [0], [1], [0, 0, 1, 1], [], []>} : vector<8x32xbf16>, vector<32x128xbf16>, vector<8x128xf32> -> vector<8x128xf32>
    %c0_24 = arith.constant 0 : index
    %c0_25 = arith.constant 0 : index
    %50 = vector.load %arg4[%c0_24, %c0_25] : memref<1x128xf32, #tpu.memory_space<vmem>>, vector<1x128xf32>
    %51 = vector.broadcast %50 : vector<1x128xf32> to vector<8x128xf32>
    %52 = arith.addf %49, %51 : vector<8x128xf32>
    %53 = arith.truncf %52 : vector<8x128xf32> to vector<8x128xbf16>
    %c0_26 = arith.constant 0 : index
    %c0_27 = arith.constant 0 : index
    %54 = vector.load %arg5[%c0_26, %c0_27] : memref<8x128xbf16, #tpu.memory_space<vmem>>, vector<8x128xbf16>
    tpu.vector_store %arg5[%c0_26, %c0_27], %53 {strides = array<i32>} : memref<8x128xbf16, #tpu.memory_space<vmem>>, vector<8x128xbf16>,
    return
  }
  func.func @transform_0(%arg0: i32) -> (i32, i32, i32) {
    %c0_i32 = arith.constant 0 : i32
    %c0_i32_0 = arith.constant 0 : i32
    %c0_i32_1 = arith.constant 0 : i32
    return %c0_i32, %arg0, %c0_i32_0 : i32, i32, i32
  }
  func.func @transform_1(%arg0: i32) -> (i32, i32, i32) {
    %c0_i32 = arith.constant 0 : i32
    %c0_i32_0 = arith.constant 0 : i32
    %c0_i32_1 = arith.constant 0 : i32
    %c0_i32_2 = arith.constant 0 : i32
    return %c0_i32, %c0_i32_0, %c0_i32_1 : i32, i32, i32
  }
  func.func @transform_2(%arg0: i32) -> (i32, i32) {
    %c0_i32 = arith.constant 0 : i32
    %c0_i32_0 = arith.constant 0 : i32
    %c0_i32_1 = arith.constant 0 : i32
    return %c0_i32, %c0_i32_0 : i32, i32
  }
  func.func @transform_3(%arg0: i32) -> (i32, i32) {
    %c0_i32 = arith.constant 0 : i32
    %c0_i32_0 = arith.constant 0 : i32
    %c0_i32_1 = arith.constant 0 : i32
    return %c0_i32, %c0_i32_0 : i32, i32
  }
  func.func @transform_4(%arg0: i32) -> (i32, i32) {
    %c0_i32 = arith.constant 0 : i32
    %c0_i32_0 = arith.constant 0 : i32
    return %arg0, %c0_i32 : i32, i32
  }
}

</mosaic_0001>

<bundles_post_ra>
// kernel: tpu_custom_call.1
= control target key start
LH: loop header
LB: loop body
LE: loop exit
PB: predicated region body
PF: predicated region fallthrough
CT: control target
= control target key end

     0   :  { %v1559_v2 = vmov 0   ;;  %s1987_s0 = inlined_call_operand.vmem [shape: s32[3,128,1], index: 0, kind: input, shape index: {}]   ;;  %s1988_s1 = inlined_call_operand.vmem [shape: bf16[3,128,32], index: 1, kind: input, shape index: {}]   ;;  %s1989_s2 = inlined_call_operand.vmem [shape: bf16[32,128], index: 2, kind: input, shape index: {}]   ;;  %s1990_s3 = inlined_call_operand.vmem [shape: f32[1,128], index: 3, kind: input, shape index: {}]   ;;  %s1991_s4 = inlined_call_operand.hbm [shape: bf16[8,128], index: 4, kind: output, shape index: {}]  }
   0x1   :  { %v23_v0 = vld [vmem:[%s1987_s0 + $0x10] sm:$0xff]  ;;  %v21_v1 = vld [vmem:[%s1987_s0] sm:$0xff]  ;;  %1508 = vset.pattern.permute.xlu1 %v1559_v2  ;;  %1507 = vset.pattern.permute.xlu0 %v1559_v2  ;;  %v24_v3 = vld [vmem:[%s1987_s0 + $0x18] sm:$0xff] }
   0x2   :  { %44 = vperm.xlu1 %1508, %v23_v0   ;;  %38 = vperm.xlu0 %1507, %v21_v1   ;;  %v22_v4 = vld [vmem:[%s1987_s0 + $0x8] sm:$0xff]  ;;  %v25_v6 = vld [vmem:[%s1987_s0 + $0x20] sm:$0xff]  ;;  %v28_v7 = vld [vmem:[%s1987_s0 + $0x38] sm:$0xff] }
   0x3   :  { %v26_v5 = vld [vmem:[%s1987_s0 + $0x28] sm:$0xff]  ;;  %v27_v8 = vld [vmem:[%s1987_s0 + $0x30] sm:$0xff]  ;;  %v29_v10 = vld [vmem:[%s1987_s0 + $0x40] sm:$0xff] }
   0x4   :  { %v30_v9 = vld [vmem:[%s1987_s0 + $0x48] sm:$0xff]  ;;  %v1509_v11 = vld [vmem:[%s1988_s1] sm:$0xff]   ;;  %v32_v13 = vld [vmem:[%s1987_s0 + $0x58] sm:$0xff] }
   0x5   :  { %v1510_v12 = vld [vmem:[%s1988_s1 + $0x8] sm:$0xff]   ;;  %v31_v14 = vld [vmem:[%s1987_s0 + $0x50] sm:$0xff]  ;;  %1382 = vmatprep.subr.bf16.mxu0 %v1509_v11  ;;  %v1515_v17 = vld [vmem:[%s1988_s1 + $0x40] sm:$0xff]  }
   0x6   :  { %47 = vperm.xlu1 %1508, %v24_v3   ;;  %41 = vperm.xlu0 %1507, %v22_v4   ;;  %v1128_v15 = vld [vmem:[%s1987_s0 + $0x88] sm:$0xff]  ;;  %v1511_v16 = vld [vmem:[%s1988_s1 + $0x10] sm:$0xff]   ;;  %v1127_v18 = vld [vmem:[%s1987_s0 + $0x80] sm:$0xff] }
   0x7   :  { %1383 = vmatpush3.bf16.msra.mxu0 %v1509_v11  ;;  %1350 = vmatprep.subr.bf16.mxu1 %v1515_v17  ;;  %v1517_v19 = vld [vmem:[%s1988_s1 + $0x48] sm:$0xff]   ;;  %v1130_v20 = vld [vmem:[%s1987_s0 + $0x98] sm:$0xff]  ;;  %v1129_v22 = vld [vmem:[%s1987_s0 + $0x90] sm:$0xff] }
   0x8   :  { %1384 = vmatprep.subr.bf16.mxu0 %v1510_v12  ;;  %v1512_v21 = vld [vmem:[%s1988_s1 + $0x18] sm:$0xff]   ;;  %1351 = vmatpush3.bf16.msra.mxu1 %v1515_v17  ;;  %v1519_v23 = vld [vmem:[%s1988_s1 + $0x50] sm:$0xff]   ;;  %v34_v24 = vld [vmem:[%s1987_s0 + $0x68] sm:$0xff] }
   0x9   :  { %1352 = vmatprep.subr.bf16.mxu1 %v1517_v19  ;;  %v1513_v25 = vld [vmem:[%s1988_s1 + $0x20] sm:$0xff]   ;;  %v1520_v27 = vld [vmem:[%s1988_s1 + $0x58] sm:$0xff]   ;;  %v1514_v29 = vld [vmem:[%s1988_s1 + $0x28] sm:$0xff]  }
   0xa   :  { %53 = vperm.xlu1 %1508, %v26_v5   ;;  %50 = vperm.xlu0 %1507, %v25_v6   ;;  %v33_v26 = vld [vmem:[%s1987_s0 + $0x60] sm:$0xff]  ;;  %v36_v28 = vld [vmem:[%s1987_s0 + $0x78] sm:$0xff]  ;;  %v35_v30 = vld [vmem:[%s1987_s0 + $0x70] sm:$0xff] }
   0xb   :  { %1385 = vmatpush3.bf16.msra.mxu0 %v1510_v12  ;;  %v1516_v31 = vld [vmem:[%s1988_s1 + $0x30] sm:$0xff]   ;;  %v1521_v32 = vld [vmem:[%s1988_s1 + $0x60] sm:$0xff]   ;;  %v1132_v33 = vld [vmem:[%s1987_s0 + $0xa8] sm:$0xff] }
   0xc   :  { %1386 = vmatprep.subr.bf16.mxu0 %v1511_v16  ;;  %1353 = vmatpush3.bf16.msra.mxu1 %v1517_v19  ;;  %v1131_v34 = vld [vmem:[%s1987_s0 + $0xa0] sm:$0xff]  ;;  %v1522_v35 = vld [vmem:[%s1988_s1 + $0x68] sm:$0xff]  }
   0xd   :  { %1354 = vmatprep.subr.bf16.mxu1 %v1519_v23 }
   0xe   :  { %59 = vperm.xlu1 %1508, %v28_v7   ;;  %56 = vperm.xlu0 %1507, %v27_v8  }
   0xf   :  { %1387 = vmatpush3.bf16.msra.mxu0 %v1511_v16 }
  0x10   :  { %1388 = vmatprep.subr.bf16.mxu0 %v1512_v21  ;;  %1355 = vmatpush3.bf16.msra.mxu1 %v1519_v23 }
  0x11   :  { %1356 = vmatprep.subr.bf16.mxu1 %v1520_v27 }
  0x12   :  { %65 = vperm.xlu1 %1508, %v30_v9   ;;  %62 = vperm.xlu0 %1507, %v29_v10  }
  0x13   :  { %1389 = vmatpush3.bf16.msra.mxu0 %v1512_v21 }
  0x14   :  { %1390 = vmatprep.subr.bf16.mxu0 %v1513_v25  ;;  %1357 = vmatpush3.bf16.msra.mxu1 %v1520_v27 }
  0x15   :  { %1358 = vmatprep.subr.bf16.mxu1 %v1521_v32 }
  0x16   :  { %71 = vperm.xlu1 %1508, %v32_v13   ;;  %68 = vperm.xlu0 %1507, %v31_v14  }
  0x17   :  { %1391 = vmatpush3.bf16.msra.mxu0 %v1513_v25 }
  0x18   :  { %1392 = vmatprep.subr.bf16.mxu0 %v1514_v29 }
  0x1a   :  { %178 = vperm.xlu1 %1508, %v1128_v15   ;;  %175 = vperm.xlu0 %1507, %v1127_v18  }
  0x1b   :  { %1393 = vmatpush3.bf16.msra.mxu0 %v1514_v29 }
  0x1e   :  { %184 = vperm.xlu1 %1508, %v1130_v20   ;;  %181 = vperm.xlu0 %1507, %v1129_v22  }
  0x22   :  { %77 = vperm.xlu1 %1508, %v34_v24   ;;  %74 = vperm.xlu0 %1507, %v33_v26  }
  0x26   :  { %83 = vperm.xlu1 %1508, %v36_v28   ;;  %80 = vperm.xlu0 %1507, %v35_v30  }
  0x27   :  { %9 = vsyncpa [#allocation3], 0  ;;  %1394 = vmatprep.subr.bf16.mxu0 %v1516_v31  ;;  %v1518_v36 = vld [vmem:[%s1988_s1 + $0x38] sm:$0xff]   ;;  %1359 = vmatpush3.bf16.msra.mxu1 %v1521_v32  ;;  %v1133_v38 = vld [vmem:[%s1987_s0 + $0xb0] sm:$0xff]  ;;  %v19_v2 = vlaneseq  ;;  %v1560_v9 = vmov 1.0|1.0  }
  0x28   :  { %v1134_v37 = vld [vmem:[%s1987_s0 + $0xb8] sm:$0xff]  ;;  %1360 = vmatprep.subr.bf16.mxu1 %v1522_v35  ;;  %v1523_v39 = vld [vmem:[%s1988_s1 + $0x70] sm:$0xff]   ;;  %1395 = vmatpush3.bf16.msra.mxu0 %v1516_v31  ;;  %v1709_v40 = vld [vmem:[%s1988_s1 + $0x80] sm:$0xff]   ;;  %s1563_s6 = smov [#allocation2]  }
  0x29   :  { %1396 = vmatprep.subr.bf16.mxu0 %v1518_v36  ;;  %v1224_v41 = vld [vmem:[%s1987_s0 + $0x108] sm:$0xff]  ;;  %v1223_v42 = vld [vmem:[%s1987_s0 + $0x100] sm:$0xff]  ;;  %v1525_v43 = vld [vmem:[%s1988_s1 + $0x78] sm:$0xff]   ;;  %v1789_v5 = vand.u32 127, %v19_v2  ;;  %s1103_s7 = sshll.u32 %s1563_s6, 4  ;;  %s1104_s7 = int_to_ptr.vmem [resolvable:$true] %s1103_s7 }
  0x2a   :  { %190 = vperm.xlu1 %1508, %v1132_v33   ;;  %187 = vperm.xlu0 %1507, %v1131_v34   ;;  %v1226_v44 = vld [vmem:[%s1987_s0 + $0x118] sm:$0xff]  ;;  %v1225_v45 = vld [vmem:[%s1987_s0 + $0x110] sm:$0xff]  ;;  %v1136_v46 = vld [vmem:[%s1987_s0 + $0xc8] sm:$0xff]  ;;  %s1535_s8 = scalar_lea.vmem %s1104_s7, 64  ;;  %p1540_p1 = scmp.lt.s32.totalorder %s1104_s7, %s1104_s7 }
  0x2b   :  { %1361 = vmatpush3.bf16.msra.mxu1 %v1522_v35  ;;  %v1135_v47 = vld [vmem:[%s1987_s0 + $0xc0] sm:$0xff]  ;;  %v1138_v48 = vld [vmem:[%s1987_s0 + $0xd8] sm:$0xff]  ;;  %v1137_v49 = vld [vmem:[%s1987_s0 + $0xd0] sm:$0xff]  ;;  %p1536_p0 = scmp.ne.s32.totalorder %s1104_s7, %s1535_s8  ;;  %p1541_p2 = scmp.lt.s32.totalorder %s1535_s8, %s1535_s8 }
  0x2c   :  { %1362 = vmatprep.subr.bf16.mxu1 %v1523_v39  ;;  %1397 = vmatpush3.bf16.msra.mxu0 %v1518_v36  ;;  %v1228_v50 = vld [vmem:[%s1987_s0 + $0x128] sm:$0xff]  ;;  %v1227_v51 = vld [vmem:[%s1987_s0 + $0x120] sm:$0xff]  ;;  %v1230_v52 = vld [vmem:[%s1987_s0 + $0x138] sm:$0xff] }
  0x2d   :  { %1414 = vmatprep.subr.bf16.mxu0 %v1709_v40  ;;  %v1229_v53 = vld [vmem:[%s1987_s0 + $0x130] sm:$0xff]  ;;  %v1140_v54 = vld [vmem:[%s1987_s0 + $0xe8] sm:$0xff]  ;;  %v1139_v55 = vld [vmem:[%s1987_s0 + $0xe0] sm:$0xff]  ;;  %p1542_p3 = por %p1541_p2, %p1540_p1 }
  0x2e   :  { %196 = vperm.xlu1 %1508, %v1134_v37   ;;  %193 = vperm.xlu0 %1507, %v1133_v38   ;;  %v1142_v56 = vld [vmem:[%s1987_s0 + $0xf8] sm:$0xff]  ;;  %v1141_v57 = vld [vmem:[%s1987_s0 + $0xf0] sm:$0xff]  ;;  %v1232_v58 = vld [vmem:[%s1987_s0 + $0x148] sm:$0xff] }
  0x2f   :  { %1363 = vmatpush3.bf16.msra.mxu1 %v1523_v39  ;;  %v1231_v59 = vld [vmem:[%s1987_s0 + $0x140] sm:$0xff]  ;;  %v1234_v60 = vld [vmem:[%s1987_s0 + $0x158] sm:$0xff]  ;;  %v1233_v61 = vld [vmem:[%s1987_s0 + $0x150] sm:$0xff]  ;;  %p1543_p4 = pnand %p1542_p3, %p1536_p0 }
  0x30   :  { %1364 = vmatprep.subr.bf16.mxu1 %v1525_v43  ;;  %v1236_v62 = vld [vmem:[%s1987_s0 + $0x168] sm:$0xff]  ;;  %v1235_v63 = vld [vmem:[%s1987_s0 + $0x160] sm:$0xff]  ;;  %v1238_v0 = vld [vmem:[%s1987_s0 + $0x178] sm:$0xff] }
  0x31   :  { %v1237_v1 = vld [vmem:[%s1987_s0 + $0x170] sm:$0xff]  ;;  %v1798_v8 = vld [vmem:[%s1988_s1 + $0x88] sm:$0xff]   ;;  %v1819_v15 = vld [vmem:[%s1988_s1 + $0x98] sm:$0xff]  }
  0x32   :  { %606 = vperm.xlu1 %1508, %v1224_v41   ;;  %603 = vperm.xlu0 %1507, %v1223_v42   ;;  %v1810_v12 = vld [vmem:[%s1988_s1 + $0x90] sm:$0xff]   ;;  %v1830_v18 = vld [vmem:[%s1988_s1 + $0xa0] sm:$0xff]   ;;  %v1839_v21 = vld [vmem:[%s1988_s1 + $0xa8] sm:$0xff]  }
  0x33   :  { %1365 = vmatpush3.bf16.msra.mxu1 %v1525_v43  ;;  %v1531_v24 = vld [vmem:[%s1988_s1 + $0xb0] sm:$0xff]   ;;  %v1532_v27 = vld [vmem:[%s1988_s1 + $0xb8] sm:$0xff]  }
  0x34   :  { %1454 = vmatprep.subr.bf16.mxu1 %v1709_v40 }
  0x36   :  { %612 = vperm.xlu1 %1508, %v1226_v44   ;;  %609 = vperm.xlu0 %1507, %v1225_v45  }
  0x3a   :  { %202 = vperm.xlu1 %1508, %v1136_v46   ;;  %199 = vperm.xlu0 %1507, %v1135_v47  }
  0x3e   :  { %208 = vperm.xlu1 %1508, %v1138_v48   ;;  %205 = vperm.xlu0 %1507, %v1137_v49  }
  0x42   :  { %618 = vperm.xlu1 %1508, %v1228_v50   ;;  %615 = vperm.xlu0 %1507, %v1227_v51  }
  0x46   :  { %624 = vperm.xlu1 %1508, %v1230_v52   ;;  %621 = vperm.xlu0 %1507, %v1229_v53  }
  0x4a   :  { %214 = vperm.xlu1 %1508, %v1140_v54   ;;  %211 = vperm.xlu0 %1507, %v1139_v55  }
  0x4e   :  { %220 = vperm.xlu1 %1508, %v1142_v56   ;;  %217 = vperm.xlu0 %1507, %v1141_v57  }
  0x52   :  { %630 = vperm.xlu1 %1508, %v1232_v58   ;;  %627 = vperm.xlu0 %1507, %v1231_v59  }
  0x56   :  { %636 = vperm.xlu1 %1508, %v1234_v60   ;;  %633 = vperm.xlu0 %1507, %v1233_v61   ;;  %v1533_v60 = vld [vmem:[%s1989_s2] sm:$0xff]   ;;  %v1561_v61 = vmov 0.0  }
  0x5a   :  { %642 = vperm.xlu1 %1508, %v1236_v62   ;;  %639 = vperm.xlu0 %1507, %v1235_v63   ;;  %v1534_v62 = vld [vmem:[%s1989_s2 + $0x8] sm:$0xff]  }
  0x5e   :  { %648 = vperm.xlu1 %1508, %v1238_v0   ;;  %645 = vperm.xlu0 %1507, %v1237_v1  }
  0x81   :  { %v45_v3 = vpop.permute.xlu1 %44  ;;  %v39_v4 = vpop.permute.xlu0 %38 }
  0x82   :  { %vm87_vm0 = vcmp.eq.s32.totalorder %v45_v3, %v1789_v5  ;;  %vm85_vm3 = vcmp.eq.s32.totalorder %v39_v4, %v1789_v5 }
  0x85   :  { %v48_v6 = vpop.permute.xlu1 %47  ;;  %v42_v7 = vpop.permute.xlu0 %41 }
  0x86   :  { %vm88_vm1 = vcmp.eq.s32.totalorder %v48_v6, %v1789_v5  ;;  %vm86_vm2 = vcmp.eq.s32.totalorder %v42_v7, %v1789_v5 }
  0x87   :  { %vm1209_vm4 = vmpackc.low %vm88_vm1, %vm87_vm0 }
  0x88   :  { %vm1207_vm5 = vmpackc.low %vm86_vm2, %vm85_vm3 }
  0x89   :  { %1398 = vmatprep.mubr.msk.bf16.mxu0 %vm1207_vm5, %v1560_v9  ;;  %v54_v10 = vpop.permute.xlu1 %53  ;;  %v51_v11 = vpop.permute.xlu0 %50 }
  0x8a   :  { %vm90_vm6 = vcmp.eq.s32.totalorder %v54_v10, %v1789_v5  ;;  %vm89_vm7 = vcmp.eq.s32.totalorder %v51_v11, %v1789_v5  ;;  %1399 = vmatmul.mubr.msk.bf16.vlgmr.msra.gmra.mrb[0].mxu0 %vm1209_vm4, %v1560_v9  ;;  %v885_v11 = vshrl.u32 %v19_v2, 7 }
  0x8b   :  { %vm1211_vm8 = vmpackc.low %vm90_vm6, %vm89_vm7  ;;  %1415 = vmatpush3.bf16.msra.mxu0 %v1709_v40 }
  0x8c   :  { %1402 = vmatprep.mubr.msk.bf16.mxu0 %vm1211_vm8, %v1560_v9  ;;  %1416 = vmatprep.subr.bf16.mxu0 %v1798_v8 }
  0x8d   :  { %v60_v13 = vpop.permute.xlu1 %59  ;;  %v57_v14 = vpop.permute.xlu0 %56 }
  0x8e   :  { %vm92_vm9 = vcmp.eq.s32.totalorder %v60_v13, %v1789_v5  ;;  %vm91_vm10 = vcmp.eq.s32.totalorder %v57_v14, %v1789_v5  ;;  %v1931_v13 = vadd.s32 8, %v885_v11 }
  0x8f   :  { %vm1213_vm11 = vmpackc.low %vm92_vm9, %vm91_vm10  ;;  %1417 = vmatpush3.bf16.msra.mxu0 %v1798_v8 }
  0x90   :  { %1418 = vmatprep.subr.bf16.mxu0 %v1810_v12 }
  0x91   :  { %v66_v16 = vpop.permute.xlu1 %65  ;;  %v63_v17 = vpop.permute.xlu0 %62 }
  0x92   :  { %vm94_vm12 = vcmp.eq.s32.totalorder %v66_v16, %v1789_v5  ;;  %vm93_vm13 = vcmp.eq.s32.totalorder %v63_v17, %v1789_v5  ;;  %1403 = vmatmul.mubr.msk.bf16.gmra.mrb[4].mxu0 %vm1213_vm11, %v1560_v9 }
  0x93   :  { %vm1215_vm14 = vmpackc.low %vm94_vm12, %vm93_vm13  ;;  %1419 = vmatpush3.bf16.msra.mxu0 %v1810_v12 }
  0x94   :  { %1406 = vmatprep.mubr.msk.bf16.mxu0 %vm1215_vm14, %v1560_v9  ;;  %1420 = vmatprep.subr.bf16.mxu0 %v1819_v15 }
  0x95   :  { %v72_v19 = vpop.permute.xlu1 %71  ;;  %v69_v20 = vpop.permute.xlu0 %68 }
  0x96   :  { %vm96_vm15 = vcmp.eq.s32.totalorder %v72_v19, %v1789_v5  ;;  %vm95_vm0 = vcmp.eq.s32.totalorder %v69_v20, %v1789_v5 }
  0x97   :  { %vm1217_vm1 = vmpackc.low %vm96_vm15, %vm95_vm0  ;;  %1421 = vmatpush3.bf16.msra.mxu0 %v1819_v15 }
  0x98   :  { %1422 = vmatprep.subr.bf16.mxu0 %v1830_v18 }
  0x99   :  { %v179_v22 = vpop.permute.xlu1 %178  ;;  %v176_v23 = vpop.permute.xlu0 %175 }
  0x9a   :  { %vm223_vm2 = vcmp.eq.s32.totalorder %v179_v22, %v1789_v5  ;;  %vm222_vm3 = vcmp.eq.s32.totalorder %v176_v23, %v1789_v5  ;;  %1407 = vmatmul.mubr.msk.bf16.gmra.mrb[8].mxu0 %vm1217_vm1, %v1560_v9 }
  0x9b   :  { %vm1183_vm4 = vmpackc.low %vm223_vm2, %vm222_vm3  ;;  %1423 = vmatpush3.bf16.msra.mxu0 %v1830_v18 }
  0x9c   :  { %1366 = vmatprep.mubr.msk.bf16.mxu1 %vm1183_vm4, %v1560_v9  ;;  %1424 = vmatprep.subr.bf16.mxu0 %v1839_v21 }
  0x9d   :  { %v185_v25 = vpop.permute.xlu1 %184  ;;  %v182_v26 = vpop.permute.xlu0 %181 }
  0x9e   :  { %vm225_vm5 = vcmp.eq.s32.totalorder %v185_v25, %v1789_v5  ;;  %vm224_vm6 = vcmp.eq.s32.totalorder %v182_v26, %v1789_v5 }
  0x9f   :  { %vm1185_vm7 = vmpackc.low %vm225_vm5, %vm224_vm6  ;;  %1425 = vmatpush3.bf16.msra.mxu0 %v1839_v21 }
  0xa0   :  { %1367 = vmatmul.mubr.msk.bf16.vlgmr.msra.gmra.mrb[0].mxu1 %vm1185_vm7, %v1560_v9  ;;  %1426 = vmatprep.subr.bf16.mxu0 %v1531_v24 }
  0xa1   :  { %v78_v28 = vpop.permute.xlu1 %77  ;;  %v75_v29 = vpop.permute.xlu0 %74  ;;  %1462 = vmatpush3.bf16.msra.mxu1 %v1709_v40 }
  0xa2   :  { %vm98_vm8 = vcmp.eq.s32.totalorder %v78_v28, %v1789_v5  ;;  %vm97_vm9 = vcmp.eq.s32.totalorder %v75_v29, %v1789_v5  ;;  %1455 = vmatprep.subr.bf16.mxu1 %v1798_v8 }
  0xa3   :  { %vm1219_vm10 = vmpackc.low %vm98_vm8, %vm97_vm9  ;;  %1427 = vmatpush3.bf16.msra.mxu0 %v1531_v24 }
  0xa4   :  { %1410 = vmatprep.mubr.msk.bf16.mxu0 %vm1219_vm10, %v1560_v9  ;;  %1428 = vmatprep.subr.bf16.mxu0 %v1532_v27 }
  0xa5   :  { %v84_v30 = vpop.permute.xlu1 %83  ;;  %v81_v31 = vpop.permute.xlu0 %80  ;;  %1463 = vmatpush3.bf16.msra.mxu1 %v1798_v8 }
  0xa6   :  { %vm100_vm11 = vcmp.eq.s32.totalorder %v84_v30, %v1789_v5  ;;  %vm99_vm12 = vcmp.eq.s32.totalorder %v81_v31, %v1789_v5  ;;  %1456 = vmatprep.subr.bf16.mxu1 %v1810_v12 }
  0xa7   :  { %vm1221_vm13 = vmpackc.low %vm100_vm11, %vm99_vm12  ;;  %1429 = vmatpush3.bf16.msra.mxu0 %v1532_v27 }
  0xa8   :  { %1411 = vmatmul.mubr.msk.bf16.gmra.mrb[12].mxu0 %vm1221_vm13, %v1560_v9 }
  0xa9   :  { %v191_v32 = vpop.permute.xlu1 %190  ;;  %v188_v33 = vpop.permute.xlu0 %187  ;;  %1464 = vmatpush3.bf16.msra.mxu1 %v1810_v12 }
  0xaa   :  { %vm227_vm14 = vcmp.eq.s32.totalorder %v191_v32, %v1789_v5  ;;  %vm226_vm15 = vcmp.eq.s32.totalorder %v188_v33, %v1789_v5  ;;  %1457 = vmatprep.subr.bf16.mxu1 %v1819_v15 }
  0xab   :  { %vm1187_vm0 = vmpackc.low %vm227_vm14, %vm226_vm15 }
  0xac   :  { %1370 = vmatprep.mubr.msk.bf16.mxu1 %vm1187_vm0, %v1560_v9 }
  0xad   :  { %v197_v34 = vpop.permute.xlu1 %196  ;;  %v194_v35 = vpop.permute.xlu0 %193  ;;  %1465 = vmatpush3.bf16.msra.mxu1 %v1819_v15 }
  0xae   :  { %vm229_vm1 = vcmp.eq.s32.totalorder %v197_v34, %v1789_v5  ;;  %vm228_vm2 = vcmp.eq.s32.totalorder %v194_v35, %v1789_v5  ;;  %1458 = vmatprep.subr.bf16.mxu1 %v1830_v18 }
  0xaf   :  { %vm1189_vm3 = vmpackc.low %vm229_vm1, %vm228_vm2 }
  0xb0   :  { %1371 = vmatmul.mubr.msk.bf16.gmra.mrb[4].mxu1 %vm1189_vm3, %v1560_v9 }
  0xb1   :  { %v607_v36 = vpop.permute.xlu1 %606  ;;  %v604_v37 = vpop.permute.xlu0 %603  ;;  %1466 = vmatpush3.bf16.msra.mxu1 %v1830_v18 }
  0xb2   :  { %vm651_vm4 = vcmp.eq.s32.totalorder %v607_v36, %v1789_v5  ;;  %vm650_vm5 = vcmp.eq.s32.totalorder %v604_v37, %v1789_v5  ;;  %1459 = vmatprep.subr.bf16.mxu1 %v1839_v21 }
  0xb3   :  { %vm1279_vm6 = vmpackc.low %vm651_vm4, %vm650_vm5 }
  0xb4   :  { %1430 = vmatprep.mubr.msk.bf16.mxu0 %vm1279_vm6, %v1560_v9 }
  0xb5   :  { %v613_v38 = vpop.permute.xlu1 %612  ;;  %v610_v39 = vpop.permute.xlu0 %609  ;;  %1467 = vmatpush3.bf16.msra.mxu1 %v1839_v21 }
  0xb6   :  { %vm653_vm7 = vcmp.eq.s32.totalorder %v613_v38, %v1789_v5  ;;  %vm652_vm8 = vcmp.eq.s32.totalorder %v610_v39, %v1789_v5  ;;  %1460 = vmatprep.subr.bf16.mxu1 %v1531_v24 }
  0xb7   :  { %vm1281_vm9 = vmpackc.low %vm653_vm7, %vm652_vm8 }
  0xb8   :  { %1431 = vmatmul.mubr.msk.bf16.vlgmr.msra.gmra.mrb[0].mxu0 %vm1281_vm9, %v1560_v9 }
  0xb9   :  { %v203_v40 = vpop.permute.xlu1 %202  ;;  %v200_v41 = vpop.permute.xlu0 %199  ;;  %1468 = vmatpush3.bf16.msra.mxu1 %v1531_v24 }
  0xba   :  { %vm231_vm10 = vcmp.eq.s32.totalorder %v203_v40, %v1789_v5  ;;  %vm230_vm11 = vcmp.eq.s32.totalorder %v200_v41, %v1789_v5  ;;  %1461 = vmatprep.subr.bf16.mxu1 %v1532_v27 }
  0xbb   :  { %vm1191_vm12 = vmpackc.low %vm231_vm10, %vm230_vm11 }
  0xbc   :  { %1374 = vmatprep.mubr.msk.bf16.mxu1 %vm1191_vm12, %v1560_v9 }
  0xbd   :  { %v209_v42 = vpop.permute.xlu1 %208  ;;  %v206_v43 = vpop.permute.xlu0 %205  ;;  %1469 = vmatpush3.bf16.msra.mxu1 %v1532_v27 }
  0xbe   :  { %vm233_vm13 = vcmp.eq.s32.totalorder %v209_v42, %v1789_v5  ;;  %vm232_vm14 = vcmp.eq.s32.totalorder %v206_v43, %v1789_v5  ;;  %1446 = vmatprep.subr.bf16.mxu1 %v1561_v61 }
  0xbf   :  { %vm1193_vm15 = vmpackc.low %vm233_vm13, %vm232_vm14 }
  0xc0   :  { %1375 = vmatmul.mubr.msk.bf16.gmra.mrb[8].mxu1 %vm1193_vm15, %v1560_v9 }
  0xc1   :  { %v619_v44 = vpop.permute.xlu1 %618  ;;  %v616_v45 = vpop.permute.xlu0 %615 }
  0xc2   :  { %vm655_vm0 = vcmp.eq.s32.totalorder %v619_v44, %v1789_v5  ;;  %vm654_vm1 = vcmp.eq.s32.totalorder %v616_v45, %v1789_v5 }
  0xc3   :  { %vm1283_vm2 = vmpackc.low %vm655_vm0, %vm654_vm1 }
  0xc4   :  { %1434 = vmatprep.mubr.msk.bf16.mxu0 %vm1283_vm2, %v1560_v9 }
  0xc5   :  { %v625_v46 = vpop.permute.xlu1 %624  ;;  %v622_v47 = vpop.permute.xlu0 %621 }
  0xc6   :  { %vm657_vm3 = vcmp.eq.s32.totalorder %v625_v46, %v1789_v5  ;;  %vm656_vm4 = vcmp.eq.s32.totalorder %v622_v47, %v1789_v5 }
  0xc7   :  { %vm1285_vm5 = vmpackc.low %vm657_vm3, %vm656_vm4 }
  0xc8   :  { %1435 = vmatmul.mubr.msk.bf16.gmra.mrb[4].mxu0 %vm1285_vm5, %v1560_v9 }
  0xc9   :  { %v215_v48 = vpop.permute.xlu1 %214  ;;  %v212_v49 = vpop.permute.xlu0 %211 }
  0xca   :  { %vm235_vm6 = vcmp.eq.s32.totalorder %v215_v48, %v1789_v5  ;;  %vm234_vm7 = vcmp.eq.s32.totalorder %v212_v49, %v1789_v5 }
  0xcb   :  { %vm1195_vm8 = vmpackc.low %vm235_vm6, %vm234_vm7 }
  0xcc   :  { %1378 = vmatprep.mubr.msk.bf16.mxu1 %vm1195_vm8, %v1560_v9  ;;  %vm1562_vm8 = vmmov 0  }
  0xcd   :  { %v221_v50 = vpop.permute.xlu1 %220  ;;  %v218_v51 = vpop.permute.xlu0 %217 }
  0xce   :  { %vm237_vm9 = vcmp.eq.s32.totalorder %v221_v50, %v1789_v5  ;;  %vm236_vm10 = vcmp.eq.s32.totalorder %v218_v51, %v1789_v5 }
  0xcf   :  { %vm1197_vm11 = vmpackc.low %vm237_vm9, %vm236_vm10  ;;  %vm890_vm9 = vcmp.lt.s32.totalorder %v1931_v13, 14  ;;  %vm909_vm10 = vcmask 261120  }
  0xd0   :  { %1379 = vmatmul.mubr.msk.bf16.gmra.mrb[12].mxu1 %vm1197_vm11, %v1560_v9  ;;  %vm1025_vm11 = vcmask 1041409  }
  0xd1   :  { %v631_v52 = vpop.permute.xlu1 %630  ;;  %v628_v53 = vpop.permute.xlu0 %627 }
  0xd2   :  { %vm659_vm12 = vcmp.eq.s32.totalorder %v631_v52, %v1789_v5  ;;  %vm658_vm13 = vcmp.eq.s32.totalorder %v628_v53, %v1789_v5 }
  0xd3   :  { %vm1287_vm14 = vmpackc.low %vm659_vm12, %vm658_vm13  ;;  %vm1027_vm12 = vcmask 1042434   ;;  %vm1029_vm13 = vcmask 1043459  }
  0xd4   :  { %1438 = vmatprep.mubr.msk.bf16.mxu0 %vm1287_vm14, %v1560_v9  ;;  %vm1031_vm14 = vcmask 1044484  }
  0xd5   :  { %v637_v54 = vpop.permute.xlu1 %636  ;;  %v634_v55 = vpop.permute.xlu0 %633 }
  0xd6   :  { %vm661_vm15 = vcmp.eq.s32.totalorder %v637_v54, %v1789_v5  ;;  %vm660_vm0 = vcmp.eq.s32.totalorder %v634_v55, %v1789_v5 }
  0xd7   :  { %vm1289_vm1 = vmpackc.low %vm661_vm15, %vm660_vm0  ;;  %vm1033_vm15 = vcmask 1045509   ;;  %vm1035_vm0 = vcmask 1046534  }
  0xd8   :  { %1439 = vmatmul.mubr.msk.bf16.gmra.mrb[8].mxu0 %vm1289_vm1, %v1560_v9  ;;  %vm1037_vm1 = vcmask 1047559  }
  0xd9   :  { %v643_v56 = vpop.permute.xlu1 %642  ;;  %v640_v57 = vpop.permute.xlu0 %639 }
  0xda   :  { %vm663_vm2 = vcmp.eq.s32.totalorder %v643_v56, %v1789_v5  ;;  %vm662_vm3 = vcmp.eq.s32.totalorder %v640_v57, %v1789_v5 }
  0xdb   :  { %vm1291_vm4 = vmpackc.low %vm663_vm2, %vm662_vm3 }
  0xdc   :  { %1442 = vmatprep.mubr.msk.bf16.mxu1 %vm1291_vm4, %v1560_v9 }
  0xdd   :  { %v649_v58 = vpop.permute.xlu1 %648  ;;  %v646_v59 = vpop.permute.xlu0 %645 }
  0xde   :  { %vm665_vm5 = vcmp.eq.s32.totalorder %v649_v58, %v1789_v5  ;;  %vm664_vm6 = vcmp.eq.s32.totalorder %v646_v59, %v1789_v5 }
  0xdf   :  { %vm1293_vm7 = vmpackc.low %vm665_vm5, %vm664_vm6 }
  0xe0   :  { %1443 = vmatmul.mubr.msk.bf16.vlgmr.msra.gmra.mrb[16].mxu1 %vm1293_vm7, %v1560_v9 }
  0xe1   :  { %1447 = vmatpush3.bf16.msra.mxu1 %v1533_v60  ;;  %1450 = vmatprep.mubr.msk.bf16.mxu1 %vm1562_vm8, %v1561_v61 }
  0xe2   :  { %1448 = vmatprep.subr.bf16.mxu1 %v1561_v61 }
  0xe5   :  { %1449 = vmatpush3.bf16.msra.mxu1 %v1534_v62 }
 0x173   :  { %v1368_v63 = vpop.f32.mrb[0].mxu1 }
 0x174   :  { %v377_v0 = vpop.f32.mrb[1].mxu1 }
 0x175   :  { %v1369_v1 = vpop.f32.mrb[2].mxu1 }
 0x176   :  { %v380_v3 = vpop.f32.mrb[3].mxu1 }
 0x17b   :  { %v1922_v4 = vpop.f32.mrb[12].mxu0 }
 0x17c   :  { %v1924_v5 = vpop.f32.mrb[13].mxu0 }
 0x17d   :  { %v1926_v6 = vpop.f32.mrb[14].mxu0 }
 0x17e   :  { %v1928_v7 = vpop.f32.mrb[15].mxu0 }
 0x183   :  { %v1372_v8 = vpop.f32.mrb[4].mxu1 }
 0x184   :  { %v393_v9 = vpop.f32.mrb[5].mxu1 }
 0x185   :  { %v1373_v10 = vpop.f32.mrb[6].mxu1 }
 0x186   :  { %v396_v12 = vpop.f32.mrb[7].mxu1 }
 0x18b   :  { %v1432_v14 = vpop.f32.mrb[0].mxu0 }
 0x18c   :  { %v1470_v15 = vadd.f32 %v1432_v14, %v1368_v63  ;;  %v805_v16 = vpop.f32.mrb[1].mxu0 }
 0x18d   :  { %v1471_v17 = vadd.f32 %v805_v16, %v377_v0  ;;  %v1433_v18 = vpop.f32.mrb[2].mxu0 }
 0x18e   :  { %v1472_v19 = vadd.f32 %v1433_v18, %v1369_v1  ;;  %v808_v20 = vpop.f32.mrb[3].mxu0  ;;  %v919_v23 = vsel %vm909_vm10, %v1470_v15, -inf }
 0x18f   :  { %v1473_v21 = vadd.f32 %v808_v20, %v380_v3  ;;  %v910_v25 = vsel %vm909_vm10, %v1471_v17, -inf }
 0x190   :  { %v896_v22 = vsel %vm890_vm9, %v1472_v19, -1e+30 }
 0x191   :  { %v920_v2 = vsel %vm909_vm10, %v896_v22, -inf  ;;  %v894_v24 = vsel %vm890_vm9, %v1473_v21, -1e+30 }
 0x192   :  { %v921_v26 = vmax.f32 %v919_v23, %v920_v2  ;;  %v911_v27 = vsel %vm909_vm10, %v894_v24, -inf }
 0x193   :  { %v912_v28 = vmax.f32 %v910_v25, %v911_v27  ;;  %v1376_v29 = vpop.f32.mrb[8].mxu1 }
 0x194   :  { %v922_v30 = vrot.slane %v921_v26, 4  ;;  %v409_v31 = vpop.f32.mrb[9].mxu1 }
 0x195   :  { %v913_v32 = vrot.slane %v912_v28, 4  ;;  %v1377_v33 = vpop.f32.mrb[10].mxu1 }
 0x196   :  { %v923_v34 = vmax.f32 %v921_v26, %v922_v30  ;;  %v412_v35 = vpop.f32.mrb[11].mxu1 }
 0x197   :  { %v914_v36 = vmax.f32 %v912_v28, %v913_v32 }
 0x198   :  { %v924_v37 = vrot.slane %v923_v34, 2 }
 0x199   :  { %v915_v38 = vrot.slane %v914_v36, 2 }
 0x19a   :  { %v925_v39 = vmax.f32 %v923_v34, %v924_v37 }
 0x19b   :  { %v916_v40 = vmax.f32 %v914_v36, %v915_v38  ;;  %v1436_v41 = vpop.f32.mrb[4].mxu0 }
 0x19c   :  { %v926_v42 = vrot.slane %v925_v39, 1  ;;  %v1474_v43 = vadd.f32 %v1436_v41, %v1372_v8  ;;  %v821_v44 = vpop.f32.mrb[5].mxu0 }
 0x19d   :  { %v917_v45 = vrot.slane %v916_v40, 1  ;;  %v1475_v46 = vadd.f32 %v821_v44, %v393_v9  ;;  %v1437_v47 = vpop.f32.mrb[6].mxu0 }
 0x19e   :  { %v927_v48 = vmax.f32 %v925_v39, %v926_v42  ;;  %v1476_v49 = vadd.f32 %v1437_v47, %v1373_v10  ;;  %v824_v50 = vpop.f32.mrb[7].mxu0  ;;  %v937_v56 = vsel %vm909_vm10, %v1474_v43, -inf }
 0x19f   :  { %v918_v51 = vmax.f32 %v916_v40, %v917_v45  ;;  %v1477_v52 = vadd.f32 %v824_v50, %v396_v12  ;;  %v928_v60 = vsel %vm909_vm10, %v1475_v46, -inf }
 0x1a0   :  { %v991_v53 = vpack.c.bf16 %v927_v48, %v927_v48  ;;  %v900_v54 = vsel %vm890_vm9, %v1476_v49, -1e+30 }
 0x1a1   :  { %v990_v55 = vpack.c.bf16 %v918_v51, %v918_v51  ;;  %v938_v57 = vsel %vm909_vm10, %v900_v54, -inf  ;;  %v898_v58 = vsel %vm890_vm9, %v1477_v52, -1e+30 }
 0x1a2   :  { %v1018_v59 = vunpack.c.l.b16 %v991_v53  ;;  %v939_v61 = vmax.f32 %v937_v56, %v938_v57  ;;  %v929_v62 = vsel %vm909_vm10, %v898_v58, -inf }
 0x1a3   :  { %v1017_v63 = vunpack.c.l.b16 %v990_v55  ;;  %v930_v0 = vmax.f32 %v928_v60, %v929_v62  ;;  %v1380_v1 = vpop.f32.mrb[12].mxu1 }
 0x1a4   :  { %v940_v3 = vrot.slane %v939_v61, 4  ;;  %v579_v8 = vadd.f32 %v1922_v4, %v1380_v1  ;;  %v425_v9 = vpop.f32.mrb[13].mxu1 }
 0x1a5   :  { %v1026_v10 = vsel %vm1025_vm11, %v1018_v59, %v1017_v63  ;;  %v931_v11 = vrot.slane %v930_v0, 4  ;;  %v571_v12 = vadd.f32 %v1924_v5, %v425_v9  ;;  %v1381_v14 = vpop.f32.mrb[14].mxu1 }
 0x1a6   :  { %v941_v15 = vmax.f32 %v939_v61, %v940_v3  ;;  %v582_v16 = vadd.f32 %v1926_v6, %v1381_v14  ;;  %v428_v17 = vpop.f32.mrb[15].mxu1 }
 0x1a7   :  { %v932_v18 = vmax.f32 %v930_v0, %v931_v11  ;;  %v574_v19 = vadd.f32 %v1928_v7, %v428_v17 }
 0x1a8   :  { %v942_v20 = vrot.slane %v941_v15, 2 }
 0x1a9   :  { %v933_v21 = vrot.slane %v932_v18, 2 }
 0x1aa   :  { %v943_v22 = vmax.f32 %v941_v15, %v942_v20 }
 0x1ab   :  { %v934_v23 = vmax.f32 %v932_v18, %v933_v21  ;;  %v1440_v2 = vpop.f32.mrb[8].mxu0 }
 0x1ac   :  { %v944_v4 = vrot.slane %v943_v22, 1  ;;  %v1478_v24 = vadd.f32 %v1440_v2, %v1376_v29  ;;  %v837_v25 = vpop.f32.mrb[9].mxu0 }
 0x1ad   :  { %v935_v26 = vrot.slane %v934_v23, 1  ;;  %v1479_v27 = vadd.f32 %v837_v25, %v409_v31  ;;  %v1441_v28 = vpop.f32.mrb[10].mxu0 }
 0x1ae   :  { %v945_v5 = vmax.f32 %v943_v22, %v944_v4  ;;  %v1480_v30 = vadd.f32 %v1441_v28, %v1377_v33  ;;  %v840_v32 = vpop.f32.mrb[11].mxu0  ;;  %v955_v38 = vsel %vm909_vm10, %v1478_v24, -inf }
 0x1af   :  { %v936_v34 = vmax.f32 %v934_v23, %v935_v26  ;;  %v1481_v6 = vadd.f32 %v840_v32, %v412_v35  ;;  %v946_v31 = vsel %vm909_vm10, %v1479_v27, -inf }
 0x1b0   :  { %v993_v36 = vpack.c.bf16 %v945_v5, %v945_v5  ;;  %v904_v7 = vsel %vm890_vm9, %v1480_v30, -1e+30 }
 0x1b1   :  { %v992_v37 = vpack.c.bf16 %v936_v34, %v936_v34  ;;  %v956_v39 = vsel %vm909_vm10, %v904_v7, -inf  ;;  %v902_v29 = vsel %vm890_vm9, %v1481_v6, -1e+30 }
 0x1b2   :  { %v957_v40 = vmax.f32 %v955_v38, %v956_v39  ;;  %v947_v33 = vsel %vm909_vm10, %v902_v29, -inf  ;;  %v1020_v43 = vunpack.c.l.b16 %v993_v36  ;;  %v1295_v38 = vld [vmem:[%s1990_s3] ss:$0 sm:$0xff] }
 0x1b3   :  { %v1019_v41 = vunpack.c.l.b16 %v992_v37  ;;  %v948_v35 = vmax.f32 %v946_v31, %v947_v33  ;;  %v1444_v42 = vpop.f32.mrb[16].mxu1 }
 0x1b4   :  { %v958_v44 = vrot.slane %v957_v40, 4  ;;  %v882_v45 = vadd.f32 %v1444_v42, %v579_v8  ;;  %v853_v46 = vpop.f32.mrb[17].mxu1 }
 0x1b5   :  { %v1028_v47 = vsel %vm1027_vm12, %v1019_v41, %v1026_v10  ;;  %v949_v48 = vrot.slane %v948_v35, 4  ;;  %v880_v49 = vadd.f32 %v853_v46, %v571_v12  ;;  %v1445_v50 = vpop.f32.mrb[18].mxu1 }
 0x1b6   :  { %v959_v51 = vmax.f32 %v957_v40, %v958_v44  ;;  %v1030_v52 = vsel %vm1029_vm13, %v1020_v43, %v1028_v47  ;;  %v883_v53 = vadd.f32 %v1445_v50, %v582_v16  ;;  %v856_v54 = vpop.f32.mrb[19].mxu1  ;;  %v973_v60 = vsel %vm909_vm10, %v882_v45, -inf }
 0x1b7   :  { %v950_v55 = vmax.f32 %v948_v35, %v949_v48  ;;  %v881_v56 = vadd.f32 %v856_v54, %v574_v19  ;;  %v964_v0 = vsel %vm909_vm10, %v880_v49, -inf }
 0x1b8   :  { %v960_v57 = vrot.slane %v959_v51, 2  ;;  %v908_v58 = vsel %vm890_vm9, %v883_v53, -1e+30 }
 0x1b9   :  { %v951_v59 = vrot.slane %v950_v55, 2  ;;  %v974_v61 = vsel %vm909_vm10, %v908_v58, -inf  ;;  %v906_v62 = vsel %vm890_vm9, %v881_v56, -1e+30 }
 0x1ba   :  { %v961_v63 = vmax.f32 %v959_v51, %v960_v57  ;;  %v975_v1 = vmax.f32 %v973_v60, %v974_v61  ;;  %v965_v3 = vsel %vm909_vm10, %v906_v62, -inf }
 0x1bb   :  { %v952_v8 = vmax.f32 %v950_v55, %v951_v59  ;;  %v966_v9 = vmax.f32 %v964_v0, %v965_v3 }
 0x1bc   :  { %v962_v10 = vrot.slane %v961_v63, 1  ;;  %v976_v11 = vrot.slane %v975_v1, 4 }
 0x1bd   :  { %v953_v12 = vrot.slane %v952_v8, 1  ;;  %v967_v14 = vrot.slane %v966_v9, 4 }
 0x1be   :  { %v963_v15 = vmax.f32 %v961_v63, %v962_v10  ;;  %v977_v16 = vmax.f32 %v975_v1, %v976_v11 }
 0x1bf   :  { %v954_v17 = vmax.f32 %v952_v8, %v953_v12  ;;  %v968_v18 = vmax.f32 %v966_v9, %v967_v14 }
 0x1c0   :  { %v995_v19 = vpack.c.bf16 %v963_v15, %v963_v15  ;;  %v978_v20 = vrot.slane %v977_v16, 2 }
 0x1c1   :  { %v994_v13 = vpack.c.bf16 %v954_v17, %v954_v17  ;;  %v969_v21 = vrot.slane %v968_v18, 2 }
 0x1c2   :  { %v979_v22 = vmax.f32 %v977_v16, %v978_v20  ;;  %v1022_v4 = vunpack.c.l.b16 %v995_v19 }
 0x1c3   :  { %v1021_v23 = vunpack.c.l.b16 %v994_v13  ;;  %v970_v2 = vmax.f32 %v968_v18, %v969_v21 }
 0x1c4   :  { %v980_v24 = vrot.slane %v979_v22, 1 }
 0x1c5   :  { %v1032_v25 = vsel %vm1031_vm14, %v1021_v23, %v1030_v52  ;;  %v971_v26 = vrot.slane %v970_v2, 1 }
 0x1c6   :  { %v981_v27 = vmax.f32 %v979_v22, %v980_v24  ;;  %v1034_v28 = vsel %vm1033_vm15, %v1022_v4, %v1032_v25 }
 0x1c7   :  { %v972_v5 = vmax.f32 %v970_v2, %v971_v26 }
 0x1c8   :  { %v997_v30 = vpack.c.bf16 %v981_v27, %v981_v27 }
 0x1c9   :  { %v996_v32 = vpack.c.bf16 %v972_v5, %v972_v5 }
 0x1ca   :  { %v1024_v6 = vunpack.c.l.b16 %v997_v30 }
 0x1cb   :  { %v1023_v34 = vunpack.c.l.b16 %v996_v32 }
 0x1cd   :  { %v1036_v36 = vsel %vm1035_vm0, %v1023_v34, %v1034_v28 }
 0x1ce   :  { %v1038_v7 = vsel %vm1037_vm1, %v1024_v6, %v1036_v36 }
 0x1cf   :  { %v1039_v37 = vpack.c.b16 %v1038_v7, %v1038_v7 }
 0x1d1   :  { %1451 = vmatmul.mubr.msk.bf16.vlgmr.msra.gmra.mrb[20].mxu1 %vm909_vm10, %v1039_v37 }
 0x2a4   :  { %v1089_v39 = vpop.f32.mrb[20].mxu1 }
 0x2a5   :  { %v1090_v29 = vadd.f32 %v1295_v38, %v1089_v39  ;;  %v1452_v31 = vpop.f32.mrb[21].mxu1 }
 0x2a6   :  { %v1092_v40 = vpop.f32.mrb[22].mxu1 }
 0x2a7   :  { %v1095_v33 = vpack.c.bf16 %v1090_v29, %v1090_v29  ;;  %v1453_v41 = vpop.f32.mrb[23].mxu1 }
 0x2a9   :  { %1096 = vst [vmem:[#allocation2] sm:$0xf] %v1095_v33 }
 0x2aa   :  { %1546 = shalt.err (!%p1543_p4)
}
 0x2ab   :  { %s1547_s3 = scalar_lea.hbm %s1991_s4, 64 }
 0x2ac   :  { %p1548_p5 = scmp.ne.s32.totalorder %s1991_s4, %s1547_s3  ;;  %p1551_p6 = scmp.lt.u32.totalorder %s1547_s3, %s1991_s4 }
 0x2ae   :  { %p1553_p7 = pnand %p1551_p6, %p1548_p5 }
 0x2b0   :  { %1556 = shalt.err (!%p1553_p7)
}
 0x2b1   :  { %1106 = dma.vmem_to_hbm [thread:$0]  %s1104_s7, 64, %s1991_s4, [#allocation3]  }
 0x2b2   :  { %1557 = dma.done.wait [#allocation3], 64  }
 0x2b3   :  { %1558 = vsyncadd [#allocation3], 4294967232 }
 0x2b4   :  { %1110 = vsyncpa [#allocation3], 1 }

</bundles_post_ra>
